<compile_context>
chip_gen: v5e
topology: v5e:2x2
jax: 0.10.0
libtpu: 0.0.40
codegen_flags: <defaults>
</compile_context>

<pallas_src>
import jax
import jax.numpy as jnp
import numpy as np
from jax.experimental import pallas as pl
from jax.experimental.pallas import tpu as pltpu

BIG_NUMBER = 1000000.0


def _round_up(x, m):
  return ((x + m - 1) // m) * m


def _vmem_capacity_bytes():
  """Physical per-core VMEM (128 MiB on v5e/v6e, 64 MiB per TC on v7x)."""
  try:
    cap = getattr(pltpu.get_tpu_info(), "vmem_capacity_bytes", None)
    if cap:
      return int(cap)
  except Exception:
    pass
  return 64 * 1024 * 1024  # conservative (v7x) fallback


def _mpnn_edge_kernel(edge_ref, adj_ref, msg2_ref, msg1g_ref, h1_ref,
                      we_ref, wo2_ref, bo2_ref, out_ref, acc_ref):
  """One (batch, i-tile) grid step: edge matmul + fused masked running max."""
  k = pl.program_id(1)

  @pl.when(k == 0)
  def _init():
    acc_ref[...] = jnp.full_like(acc_ref, -BIG_NUMBER)

  tile_i = adj_ref.shape[1]
  n_j = adj_ref.shape[2]
  mid = we_ref.shape[1]

  # Edge messages for this i-tile on the MXU: (tile_i*n_j, H) @ (H, mid).
  # The edge block arrives pre-flattened from the wrapper (no reshape of the
  # HBM-streamed block); the result reshape below is a free view because n_j
  # is padded to a multiple of 8 (sublane-aligned split).
  msg_e = jnp.dot(edge_ref[0], we_ref[...],
                  preferred_element_type=jnp.float32)
  msg_e = msg_e.reshape(tile_i, n_j, mid)

  # partial[i, j, :] = msg_2[i] + msg_e[i, j]; msg_1[j] + msg_g + b_e hoisted.
  partial = msg_e + msg2_ref[0][:, None, :]
  masked = jnp.where(adj_ref[0][:, :, None] > 0, partial, -BIG_NUMBER)
  acc_ref[...] = jnp.maximum(acc_ref[...], jnp.max(masked, axis=0))

  @pl.when(k == pl.num_programs(1) - 1)
  def _finalize():
    acc = acc_ref[...]
    # Add the hoisted i-invariant terms.  Columns with no unmasked incoming
    # edge stay at exactly -BIG_NUMBER like the reference (CLRS adjacency has
    # self-loops so this never triggers; the clamp assumes legitimate maxima
    # are > -0.5 * BIG_NUMBER, which holds for normalized features).
    msgs_red = jnp.where(acc > -0.5 * BIG_NUMBER, acc + msg1g_ref[0],
                         -BIG_NUMBER)
    h_2 = jnp.dot(msgs_red, wo2_ref[...],
                  preferred_element_type=jnp.float32) + bo2_ref[...]
    out_ref[0] = jnp.maximum(h1_ref[0] + h_2, 0.0).astype(out_ref.dtype)


def mpnn_forward(node_fts, edge_fts, graph_fts, adj_mat, hidden, params, *,
                 edge_compute_dtype=jnp.bfloat16, tile_i=None):
  """Returns (node_embeddings, None) like MPNN.forward (tri_msgs is None)."""
  b, n, h = node_fts.shape
  assert edge_fts.shape == (b, n, n, h)
  mid = params["w1"].shape[1]
  out_size = params["wo1"].shape[1]
  f32 = jnp.float32

  # ---- i-invariant per-node / per-graph matmuls: one fused batched matmul
  #      in XLA (negligible vs the edge stream; keeps MXU-starving skinny
  #      per-grid-step matmuls out of the kernel). ----
  z = jnp.concatenate([node_fts, hidden], axis=-1).astype(f32)           # (B,N,2H)
  w_cat = jnp.concatenate(
      [params["w1"], params["w2"], params["wo1"]], axis=1).astype(f32)   # (2H, 2*mid+out)
  b_cat = jnp.concatenate(
      [params["b1"], params["b2"], params["bo1"]], axis=1).astype(f32)
  zc = jnp.einsum("bnk,km->bnm", z, w_cat) + b_cat[0]
  msg_2 = zc[..., mid:2 * mid]                                           # indexed by i
  h_1 = zc[..., 2 * mid:]                                                # indexed by j
  msg_g = (graph_fts.astype(f32) @ params["wg"].astype(f32)
           + params["bg"][0].astype(f32))
  # msg_1[j] + msg_g + b_e are i-invariant under the max over i, so they are
  # hoisted out of the kernel's masked max (edge bias folded here: max(x + c)
  # = max(x) + c) and added after the reduction.
  msg1g = zc[..., :mid] + msg_g[:, None, :] + params["be"][0].astype(f32)

  # ---- lane-dense channel padding (mid/out -> multiple of 128): unmasked
  #      vst for msg_e / acc / out and dense MXU columns for small configs. ----
  mid_p = _round_up(mid, 128)
  out_p = _round_up(out_size, 128)

  def pad_last(x, new):
    d = new - x.shape[-1]
    return x if d == 0 else jnp.pad(x, [(0, 0)] * (x.ndim - 1) + [(0, d)])

  we = pad_last(params["we"].astype(edge_compute_dtype), mid_p)          # (H, mid_p)
  wo2 = pad_last(jnp.pad(params["wo2"].astype(f32),
                         ((0, mid_p - mid), (0, 0))), out_p)             # (mid_p, out_p)
  bo2 = pad_last(params["bo2"].astype(f32), out_p)                       # (1, out_p)
  msg_2 = pad_last(msg_2, mid_p)
  msg1g = pad_last(msg1g, mid_p)
  h_1 = pad_last(h_1, out_p)

  # ---- generation-aware i-tile selection.  HBM-bound on all generations, so
  #      pick the largest tile whose double-buffered edge block + matmul/
  #      select temporaries fit scoped VMEM: ~16 MiB edge blocks on 128 MiB
  #      parts (v5e/v6e), ~5 MiB on 64 MiB v7x. ----
  e_item = np.dtype(edge_compute_dtype).itemsize
  n_j = _round_up(n, 8)       # j axis padded to sublane quantum
  n8 = _round_up(n, 8)        # i axis padded to sublane quantum
  vmem_cap = _vmem_capacity_bytes()
  edge_target = (16 * 1024 * 1024 if vmem_cap >= 96 * 1024 * 1024
                 else 5 * 1024 * 1024)
  if tile_i is None:
    row_bytes = max(1, n_j * h * e_item)
    tile_i = max(8, (edge_target // row_bytes) // 8 * 8)
  tile_i = max(8, min((int(tile_i) // 8) * 8, n8))
  if n8 % tile_i != 0:
    # Largest 8-aligned divisor of the padded i extent <= requested tile, so
    # odd N never falls back to a full-N (possibly VMEM-busting) edge slab.
    best = 8
    for d in range(8, tile_i + 1, 8):
      if n8 % d == 0:
        best = d
    tile_i = best
  n_i = n8
  num_k = n_i // tile_i

  # ---- kernel operands: pad i/j axes with zeros (padded adj rows/cols are
  #      fully masked -> reduce to -BIG, numerically safe), then flatten the
  #      edge (i, j) axes in the wrapper so the kernel never reshapes the big
  #      HBM block. ----
  edge = edge_fts.astype(edge_compute_dtype)
  adj = adj_mat.astype(f32)
  if n_i != n or n_j != n:
    edge = jnp.pad(edge, ((0, 0), (0, n_i - n), (0, n_j - n), (0, 0)))
    adj = jnp.pad(adj, ((0, 0), (0, n_i - n), (0, n_j - n)))
    msg_2 = jnp.pad(msg_2, ((0, 0), (0, n_i - n), (0, 0)))
    msg1g = jnp.pad(msg1g, ((0, 0), (0, n_j - n), (0, 0)))
    h_1 = jnp.pad(h_1, ((0, 0), (0, n_j - n), (0, 0)))
  edge = edge.reshape(b, n_i * n_j, h)   # contiguous; free in HBM

  # ---- explicit scoped-VMEM budget: double-buffered blocks, resident
  #      weights, accumulator AND the msg_e / partial / masked temporaries
  #      (the review's v7x concern). ----
  h8 = _round_up(h, 8)
  tmp_bytes = 3 * tile_i * n_j * mid_p * 4
  blk_bytes = (
      2 * (tile_i * n_j * h * e_item          # edge (double-buffered)
           + tile_i * n_j * 4                 # adj
           + tile_i * mid_p * 4)              # msg_2
      + 2 * (n_j * mid_p * 4 + 2 * n_j * out_p * 4)   # msg1g, h_1, out
      + 2 * (h8 * mid_p * e_item + mid_p * out_p * 4 + out_p * 4)  # weights
      + n_j * mid_p * 4                       # acc scratch
      + tmp_bytes)
  vmem_limit = int(min(vmem_cap * 7 // 8,
                       max(32 * 1024 * 1024, blk_bytes * 5 // 4 + (2 << 20))))

  in_specs = [
      pl.BlockSpec((1, tile_i * n_j, h), lambda i, k: (i, k, 0)),   # edge (flat i,j)
      pl.BlockSpec((1, tile_i, n_j), lambda i, k: (i, k, 0)),       # adj_mat
      pl.BlockSpec((1, tile_i, mid_p), lambda i, k: (i, k, 0)),     # msg_2
      pl.BlockSpec((1, n_j, mid_p), lambda i, k: (i, 0, 0)),        # msg_1+msg_g+b_e
      pl.BlockSpec((1, n_j, out_p), lambda i, k: (i, 0, 0)),        # h_1
      pl.BlockSpec((h, mid_p), lambda i, k: (0, 0)),                # we (resident)
      pl.BlockSpec((mid_p, out_p), lambda i, k: (0, 0)),            # wo2
      pl.BlockSpec((1, out_p), lambda i, k: (0, 0)),                # bo2
  ]

  out_full = pl.pallas_call(
      _mpnn_edge_kernel,
      out_shape=jax.ShapeDtypeStruct((b, n_j, out_p), node_fts.dtype),
      grid=(b, num_k),
      in_specs=in_specs,
      out_specs=pl.BlockSpec((1, n_j, out_p), lambda i, k: (i, 0, 0)),
      scratch_shapes=[pltpu.VMEM((n_j, mid_p), jnp.float32)],
      compiler_params=pltpu.CompilerParams(
          dimension_semantics=("parallel", "arbitrary"),
          vmem_limit_bytes=vmem_limit),
  )(edge, adj, msg_2, msg1g, h_1, we, wo2, bo2)

  # TODO(synk): v7x-only extras not wired in: a "parallel" j-tile grid axis so
  # megacore has work when B is small, and an fp8(e4m3) edge path on top of
  # bf16 — both need per-generation gating and an accuracy sign-off.
  return out_full[:, :n, :out_size], None   # tri_msgs is None (use_triplets=False)


def init_params(key, mid_size, out_size, dtype=jnp.float32):
  """Deterministic synthetic parameters (Linear weights stored as (in, out))."""
  ks = jax.random.split(key, 6)
  scale = 0.1

  def lin(k, d_in, d_out):
    kw, kb = jax.random.split(k)
    w = scale * jax.random.normal(kw, (d_in, d_out), dtype)
    b = scale * jax.random.normal(kb, (1, d_out), dtype)
    return w, b

  w1, b1 = lin(ks[0], 2 * mid_size, mid_size)
  w2, b2 = lin(ks[1], 2 * mid_size, mid_size)
  we, be = lin(ks[2], mid_size, mid_size)
  wg, bg = lin(ks[3], mid_size, mid_size)
  wo1, bo1 = lin(ks[4], 2 * mid_size, out_size)
  wo2, bo2 = lin(ks[5], mid_size, out_size)
  return dict(w1=w1, b1=b1, w2=w2, b2=b2, we=we, be=be, wg=wg, bg=bg,
              wo1=wo1, bo1=bo1, wo2=wo2, bo2=bo2)


def mpnn_reference(node_fts, edge_fts, graph_fts, adj_mat, hidden, p):
  """Pure-JAX reference mirroring the PyTorch forward (default config)."""
  z = jnp.concatenate([node_fts, hidden], axis=-1)
  msg_1 = z @ p["w1"] + p["b1"][0]
  msg_2 = z @ p["w2"] + p["b2"][0]
  msg_e = edge_fts @ p["we"] + p["be"][0]
  msg_g = graph_fts @ p["wg"] + p["bg"][0]
  msgs = (msg_1[:, None, :, :] + msg_2[:, :, None, :] + msg_e
          + msg_g[:, None, None, :])
  maxarg = jnp.where(adj_mat[..., None] > 0, msgs, -BIG_NUMBER)
  msgs = jnp.max(maxarg, axis=1)
  h_1 = z @ p["wo1"] + p["bo1"][0]
  h_2 = msgs @ p["wo2"] + p["bo2"][0]
  return jax.nn.relu(h_1 + h_2)


def _make_inputs(key, b, n, h):
  ks = jax.random.split(key, 5)
  node = jax.random.normal(ks[0], (b, n, h), jnp.float32)
  edge = jax.random.normal(ks[1], (b, n, n, h), jnp.float32)
  graph = jax.random.normal(ks[2], (b, h), jnp.float32)
  adj = (jax.random.uniform(ks[3], (b, n, n)) > 0.5).astype(jnp.float32)
  adj = jnp.maximum(adj, jnp.eye(n, dtype=jnp.float32)[None])   # CLRS self-loops
  hid = jax.random.normal(ks[4], (b, n, h), jnp.float32)
  return node, edge, graph, adj, hid


if __name__ == "__main__":
  B, N, H = 2, 8, 32        # hidden dim H == mid_size == out_size
  OUT = H

  key = jax.random.PRNGKey(0)
  k_in, k_param, k_in2, k_in3 = jax.random.split(key, 4)

  params = init_params(k_param, mid_size=H, out_size=OUT)

  # --- f32 edge path (exact semantics; exercises mid=32 -> 128 lane pad) ---
  node, edge, graph, adj, hid = _make_inputs(k_in, B, N, H)
  ref = mpnn_reference(node, edge, graph, adj, hid, params)
  out_f32, tri_msgs = mpnn_forward(node, edge, graph, adj, hid, params,
                                   edge_compute_dtype=jnp.float32)
  out_f32 = jax.block_until_ready(out_f32)
  assert tri_msgs is None
  assert out_f32.shape == (B, N, OUT)
  assert jnp.allclose(out_f32, ref, atol=1e-4, rtol=1e-4), "f32 mismatch"

  # --- default bf16 edge path (halves the dominant HBM stream) ---
  out_bf16, _ = mpnn_forward(node, edge, graph, adj, hid, params)
  out_bf16 = jax.block_until_ready(out_bf16)
  assert jnp.allclose(out_bf16, ref, atol=0.15, rtol=0.15), "bf16 mismatch"

  # --- non-8-aligned N: exercises i/j zero-padding and the multi-tile
  #     running-max accumulator (N=12 -> padded to 16, tile_i=8, 2 k-steps) ---
  N2 = 12
  node2, edge2, graph2, adj2, hid2 = _make_inputs(k_in2, B, N2, H)
  ref2 = mpnn_reference(node2, edge2, graph2, adj2, hid2, params)
  out2, _ = mpnn_forward(node2, edge2, graph2, adj2, hid2, params,
                         edge_compute_dtype=jnp.float32, tile_i=8)
  out2 = jax.block_until_ready(out2)
  assert out2.shape == (B, N2, OUT)
  assert jnp.allclose(out2, ref2, atol=1e-4, rtol=1e-4), "padded/tiled mismatch"

  # --- bf16 multi i-tile run (N=16, tile_i=8) ---
  N3 = 16
  node3, edge3, graph3, adj3, hid3 = _make_inputs(k_in3, B, N3, H)
  ref3 = mpnn_reference(node3, edge3, graph3, adj3, hid3, params)
  out3, _ = mpnn_forward(node3, edge3, graph3, adj3, hid3, params, tile_i=8)
  out3 = jax.block_until_ready(out3)
  assert jnp.allclose(out3, ref3, atol=0.15, rtol=0.15), "bf16 tiled mismatch"

  print("KERNEL_OK")
</pallas_src>

<mosaic_0001>
module attributes {stable_mosaic.version = 11 : i64} {
  func.func @_mpnn_edge_kernel(%arg0: i32, %arg1: i32, %arg2: memref<1x64x32xf32, #tpu.memory_space<vmem>>, %arg3: memref<1x8x8xf32, #tpu.memory_space<vmem>>, %arg4: memref<1x8x128xf32, #tpu.memory_space<vmem>>, %arg5: memref<1x8x128xf32, #tpu.memory_space<vmem>>, %arg6: memref<1x8x128xf32, #tpu.memory_space<vmem>>, %arg7: memref<32x128xf32, #tpu.memory_space<vmem>>, %arg8: memref<128x128xf32, #tpu.memory_space<vmem>>, %arg9: memref<1x128xf32, #tpu.memory_space<vmem>>, %arg10: memref<1x8x128xf32, #tpu.memory_space<vmem>>, %arg11: memref<8x128xf32, #tpu.memory_space<vmem>>) attributes {dimension_semantics = [#tpu.dimension_semantics<parallel>, #tpu.dimension_semantics<arbitrary>], iteration_bounds = array<i64: 2, 1>, scalar_prefetch = 0 : i64, scratch_operands = 1 : i64, tpu.core_type = #tpu.core_type<tc>, window_params = [{transform_indices = @transform_0, window_bounds = array<i64: 1, 64, 32>}, {transform_indices = @transform_1, window_bounds = array<i64: 1, 8, 8>}, {transform_indices = @transform_2, window_bounds = array<i64: 1, 8, 128>}, {transform_indices = @transform_3, window_bounds = array<i64: 1, 8, 128>}, {transform_indices = @transform_4, window_bounds = array<i64: 1, 8, 128>}, {pipeline_mode = #tpu.pipeline_mode<synchronous>, transform_indices = @transform_5, window_bounds = array<i64: 32, 128>}, {pipeline_mode = #tpu.pipeline_mode<synchronous>, transform_indices = @transform_6, window_bounds = array<i64: 128, 128>}, {pipeline_mode = #tpu.pipeline_mode<synchronous>, transform_indices = @transform_7, window_bounds = array<i64: 1, 128>}, {transform_indices = @transform_8, window_bounds = array<i64: 1, 8, 128>}]} {
    %c0_i32 = arith.constant 0 : i32
    %0 = arith.cmpi eq, %arg1, %c0_i32 : i32
    %1 = arith.extui %0 : i1 to i32
    %c0_i32_0 = arith.constant 0 : i32
    %2 = arith.cmpi ne, %1, %c0_i32_0 : i32
    scf.if %2 {
      %cst_20 = arith.constant -1.000000e+06 : f32
      %29 = vector.broadcast %cst_20 : f32 to vector<8x128xf32>
      %c0_21 = arith.constant 0 : index
      %c0_22 = arith.constant 0 : index
      %30 = vector.load %arg11[%c0_21, %c0_22] : memref<8x128xf32, #tpu.memory_space<vmem>>, vector<8x128xf32>
      tpu.vector_store %arg11[%c0_21, %c0_22], %29 {strides = array<i32>} : memref<8x128xf32, #tpu.memory_space<vmem>>, vector<8x128xf32>,
    } else {
    }
    %c0 = arith.constant 0 : index
    %c0_1 = arith.constant 0 : index
    %c0_2 = arith.constant 0 : index
    %3 = vector.load %arg2[%c0, %c0_1, %c0_2] : memref<1x64x32xf32, #tpu.memory_space<vmem>>, vector<1x64x32xf32>
    %4 = vector.shape_cast %3 : vector<1x64x32xf32> to vector<64x32xf32>
    %c0_3 = arith.constant 0 : index
    %c0_4 = arith.constant 0 : index
    %5 = vector.load %arg7[%c0_3, %c0_4] : memref<32x128xf32, #tpu.memory_space<vmem>>, vector<32x128xf32>
    %cst = arith.constant dense<0.000000e+00> : vector<64x128xf32>
    %6 = tpu.matmul %4, %5, %cst {dimension_numbers = #tpu.dot_dimension_numbers<[1], [0], [0], [1], [0, 0, 1, 1], [], []>} : vector<64x32xf32>, vector<32x128xf32>, vector<64x128xf32> -> vector<64x128xf32>
    %7 = vector.shape_cast %6 : vector<64x128xf32> to vector<8x8x128xf32>
    %c0_5 = arith.constant 0 : index
    %c0_6 = arith.constant 0 : index
    %c0_7 = arith.constant 0 : index
    %8 = vector.load %arg4[%c0_5, %c0_6, %c0_7] : memref<1x8x128xf32, #tpu.memory_space<vmem>>, vector<1x8x128xf32>
    %9 = vector.shape_cast %8 : vector<1x8x128xf32> to vector<8x128xf32>
    %10 = vector.shape_cast %9 : vector<8x128xf32> to vector<8x1x128xf32>
    %11 = vector.broadcast %10 : vector<8x1x128xf32> to vector<8x8x128xf32>
    %12 = arith.addf %7, %11 : vector<8x8x128xf32>
    %c0_8 = arith.constant 0 : index
    %c0_9 = arith.constant 0 : index
    %c0_10 = arith.constant 0 : index
    %13 = vector.load %arg3[%c0_8, %c0_9, %c0_10] : memref<1x8x8xf32, #tpu.memory_space<vmem>>, vector<1x8x8xf32>
    %14 = vector.shape_cast %13 : vector<1x8x8xf32> to vector<8x8xf32>
    %15 = vector.shape_cast %14 : vector<8x8xf32> to vector<8x8x1xf32>
    %cst_11 = arith.constant 0.000000e+00 : f32
    %16 = vector.broadcast %cst_11 : f32 to vector<8x8x1xf32>
    %17 = arith.cmpf ogt, %15, %16 : vector<8x8x1xf32>
    %cst_12 = arith.constant -1.000000e+06 : f32
    %18 = vector.shape_cast %17 : vector<8x8x1xi1> to vector<8x8x1xi1>
    %19 = vector.broadcast %18 : vector<8x8x1xi1> to vector<8x8x128xi1>
    %20 = vector.broadcast %cst_12 : f32 to vector<8x8x128xf32>
    %21 = arith.select %19, %12, %20 : vector<8x8x128xi1>, vector<8x8x128xf32>
    %c0_13 = arith.constant 0 : index
    %c0_14 = arith.constant 0 : index
    %22 = vector.load %arg11[%c0_13, %c0_14] : memref<8x128xf32, #tpu.memory_space<vmem>>, vector<8x128xf32>
    %cst_15 = arith.constant dense<0xFF800000> : vector<8x128xf32>
    %23 = vector.multi_reduction <maximumf>, %21, %cst_15 [0] : vector<8x8x128xf32> to vector<8x128xf32>
    %24 = arith.maximumf %22, %23 : vector<8x128xf32>
    %c0_16 = arith.constant 0 : index
    %c0_17 = arith.constant 0 : index
    %25 = vector.load %arg11[%c0_16, %c0_17] : memref<8x128xf32, #tpu.memory_space<vmem>>, vector<8x128xf32>
    tpu.vector_store %arg11[%c0_16, %c0_17], %24 {strides = array<i32>} : memref<8x128xf32, #tpu.memory_space<vmem>>, vector<8x128xf32>,
    %c0_i32_18 = arith.constant 0 : i32
    %26 = arith.cmpi eq, %arg1, %c0_i32_18 : i32
    %27 = arith.extui %26 : i1 to i32
    %c0_i32_19 = arith.constant 0 : i32
    %28 = arith.cmpi ne, %27, %c0_i32_19 : i32
    scf.if %28 {
      %c0_20 = arith.constant 0 : index
      %c0_21 = arith.constant 0 : index
      %29 = vector.load %arg11[%c0_20, %c0_21] : memref<8x128xf32, #tpu.memory_space<vmem>>, vector<8x128xf32>
      %cst_22 = arith.constant -5.000000e+05 : f32
      %30 = vector.broadcast %cst_22 : f32 to vector<8x128xf32>
      %31 = arith.cmpf ogt, %29, %30 : vector<8x128xf32>
      %c0_23 = arith.constant 0 : index
      %c0_24 = arith.constant 0 : index
      %c0_25 = arith.constant 0 : index
      %32 = vector.load %arg5[%c0_23, %c0_24, %c0_25] : memref<1x8x128xf32, #tpu.memory_space<vmem>>, vector<1x8x128xf32>
      %33 = vector.shape_cast %32 : vector<1x8x128xf32> to vector<8x128xf32>
      %34 = arith.addf %29, %33 : vector<8x128xf32>
      %cst_26 = arith.constant -1.000000e+06 : f32
      %35 = vector.broadcast %cst_26 : f32 to vector<8x128xf32>
      %36 = arith.select %31, %34, %35 : vector<8x128xi1>, vector<8x128xf32>
      %c0_27 = arith.constant 0 : index
      %c0_28 = arith.constant 0 : index
      %37 = vector.load %arg8[%c0_27, %c0_28] : memref<128x128xf32, #tpu.memory_space<vmem>>, vector<128x128xf32>
      %cst_29 = arith.constant dense<0.000000e+00> : vector<8x128xf32>
      %38 = tpu.matmul %36, %37, %cst_29 {dimension_numbers = #tpu.dot_dimension_numbers<[1], [0], [0], [1], [0, 0, 1, 1], [], []>} : vector<8x128xf32>, vector<128x128xf32>, vector<8x128xf32> -> vector<8x128xf32>
      %c0_30 = arith.constant 0 : index
      %c0_31 = arith.constant 0 : index
      %39 = vector.load %arg9[%c0_30, %c0_31] : memref<1x128xf32, #tpu.memory_space<vmem>>, vector<1x128xf32>
      %40 = vector.broadcast %39 : vector<1x128xf32> to vector<8x128xf32>
      %41 = arith.addf %38, %40 : vector<8x128xf32>
      %c0_32 = arith.constant 0 : index
      %c0_33 = arith.constant 0 : index
      %c0_34 = arith.constant 0 : index
      %42 = vector.load %arg6[%c0_32, %c0_33, %c0_34] : memref<1x8x128xf32, #tpu.memory_space<vmem>>, vector<1x8x128xf32>
      %43 = vector.shape_cast %42 : vector<1x8x128xf32> to vector<8x128xf32>
      %44 = arith.addf %43, %41 : vector<8x128xf32>
      %cst_35 = arith.constant 0.000000e+00 : f32
      %45 = vector.broadcast %cst_35 : f32 to vector<8x128xf32>
      %46 = arith.maximumf %44, %45 : vector<8x128xf32>
      %c0_36 = arith.constant 0 : index
      %c0_37 = arith.constant 0 : index
      %c0_38 = arith.constant 0 : index
      %47 = vector.load %arg10[%c0_36, %c0_37, %c0_38] : memref<1x8x128xf32, #tpu.memory_space<vmem>>, vector<1x8x128xf32>
      %48 = vector.shape_cast %47 : vector<1x8x128xf32> to vector<8x128xf32>
      %49 = vector.shape_cast %46 : vector<8x128xf32> to vector<1x8x128xf32>
      tpu.vector_store %arg10[%c0_36, %c0_37, %c0_38], %49 {strides = array<i32>} : memref<1x8x128xf32, #tpu.memory_space<vmem>>, vector<1x8x128xf32>,
    } else {
    }
    return
  }
  func.func @transform_0(%arg0: i32, %arg1: i32) -> (i32, i32, i32) {
    %c0_i32 = arith.constant 0 : i32
    %c0_i32_0 = arith.constant 0 : i32
    return %arg0, %arg1, %c0_i32 : i32, i32, i32
  }
  func.func @transform_1(%arg0: i32, %arg1: i32) -> (i32, i32, i32) {
    %c0_i32 = arith.constant 0 : i32
    %c0_i32_0 = arith.constant 0 : i32
    return %arg0, %arg1, %c0_i32 : i32, i32, i32
  }
  func.func @transform_2(%arg0: i32, %arg1: i32) -> (i32, i32, i32) {
    %c0_i32 = arith.constant 0 : i32
    %c0_i32_0 = arith.constant 0 : i32
    return %arg0, %arg1, %c0_i32 : i32, i32, i32
  }
  func.func @transform_3(%arg0: i32, %arg1: i32) -> (i32, i32, i32) {
    %c0_i32 = arith.constant 0 : i32
    %c0_i32_0 = arith.constant 0 : i32
    %c0_i32_1 = arith.constant 0 : i32
    return %arg0, %c0_i32, %c0_i32_0 : i32, i32, i32
  }
  func.func @transform_4(%arg0: i32, %arg1: i32) -> (i32, i32, i32) {
    %c0_i32 = arith.constant 0 : i32
    %c0_i32_0 = arith.constant 0 : i32
    %c0_i32_1 = arith.constant 0 : i32
    return %arg0, %c0_i32, %c0_i32_0 : i32, i32, i32
  }
  func.func @transform_5(%arg0: i32, %arg1: i32) -> (i32, i32) {
    %c0_i32 = arith.constant 0 : i32
    %c0_i32_0 = arith.constant 0 : i32
    %c0_i32_1 = arith.constant 0 : i32
    return %c0_i32, %c0_i32_0 : i32, i32
  }
  func.func @transform_6(%arg0: i32, %arg1: i32) -> (i32, i32) {
    %c0_i32 = arith.constant 0 : i32
    %c0_i32_0 = arith.constant 0 : i32
    %c0_i32_1 = arith.constant 0 : i32
    return %c0_i32, %c0_i32_0 : i32, i32
  }
  func.func @transform_7(%arg0: i32, %arg1: i32) -> (i32, i32) {
    %c0_i32 = arith.constant 0 : i32
    %c0_i32_0 = arith.constant 0 : i32
    %c0_i32_1 = arith.constant 0 : i32
    return %c0_i32, %c0_i32_0 : i32, i32
  }
  func.func @transform_8(%arg0: i32, %arg1: i32) -> (i32, i32, i32) {
    %c0_i32 = arith.constant 0 : i32
    %c0_i32_0 = arith.constant 0 : i32
    %c0_i32_1 = arith.constant 0 : i32
    return %arg0, %c0_i32, %c0_i32_0 : i32, i32, i32
  }
}

</mosaic_0001>

<bundles_post_ra>
// kernel: tpu_custom_call.1
= control target key start
LH: loop header
LB: loop body
LE: loop exit
PB: predicated region body
PF: predicated region fallthrough
CT: control target
= control target key end

     0   :  { %13 = vsyncpa [#allocation4], 0  ;;  %s1436_s0 = inlined_call_operand.vmem [shape: f32[2,64,32], index: 0, kind: input, shape index: {}]   ;;  %s1437_s1 = inlined_call_operand.vmem [shape: f32[2,8,8], index: 1, kind: input, shape index: {}]   ;;  %s1438_s2 = inlined_call_operand.vmem [shape: f32[2,8,128], index: 2, kind: input, shape index: {}]   ;;  %s1439_s3 = inlined_call_operand.hbm [shape: f32[2,8,128], index: 3, kind: input, shape index: {}]   ;;  %s1440_s4 = inlined_call_operand.hbm [shape: f32[2,8,128], index: 4, kind: input, shape index: {}]   ;;  %s1441_s5 = inlined_call_operand.vmem [shape: f32[32,128], index: 5, kind: input, shape index: {}]   ;;  %s1442_s6 = inlined_call_operand.vmem [shape: f32[128,128], index: 6, kind: input, shape index: {}]   ;;  %s1443_s7 = inlined_call_operand.vmem [shape: f32[1,128], index: 7, kind: input, shape index: {}]   ;;  %s1444_s8 = inlined_call_operand.hbm [shape: f32[2,8,128], index: 8, kind: output, shape index: {}]  }
   0x1   :  { %15 = vsyncpa [#allocation4 + $0x1], 0 }
   0x2   :  { %16 = vsyncpa [#allocation7], 0 }
   0x3   :  { %18 = vsyncpa [#allocation7 + $0x1], 0 }
   0x4   :  { %19 = vsyncpa [#allocation5], 0 }
   0x5   :  { %21 = vsyncpa [#allocation5 + $0x1], 0  ;;  %s1199_s27 = smov 0   ;;  %s1201_s28 = smov 0  }
   0x6   :  { %s1203_s29 = smov 0   ;;  %s1205_s30 = smov 0  }
   0x7   :  { %s1207_s9 = smov 0   ;;  %s1209_s10 = smov 0  }
   0x8 LB: > { %1449 = sst [smem:[#allocation12_spill]] %s1140_s29  ;;  %s898_s11 = sadd.s32 4294967295, %s1152_s10   ;;  %s1152_s10 = sphi %s1209_s10, %s27_s10   ;;  %s1148_s9 = sphi %s1207_s9, %s1466_s9   ;;  %s1144_s30 = sphi %s1205_s30, %s1462_s30   ;;  %s1140_s29 = sphi %s1203_s29, %s1461_s29   ;;  %s1136_s28 = sphi %s1201_s28, %s1465_s28   ;;  %s1132_s27 = sphi %s1199_s27, %s1464_s27  }
   0x9   : > { %1450 = sst [smem:[#allocation13_spill]] %s1148_s9  ;;  %s899_s12 = sadd.s32 4294967294, %s1152_s10  }
   0xa   : > { %s39_s13 = sadd.s32 1, %s1148_s9  ;;  %s130_s14 = sadd.s32 1, %s1140_s29 }
   0xb   : > { %p41_p0 = scmp.ge.s32.totalorder %s39_s13, 2  ;;  %p137_p1 = scmp.ne.s32.totalorder %s1140_s29, %s1136_s28 }
   0xc   : > { %p138_p2 = scmp.eq.s32.totalorder %s1152_s10, 0  ;;  %p143_p3 = scmp.ne.s32.totalorder %s1136_s28, %s1132_s27 }
   0xd   : > { %s1468_s13 = smov (%p41_p0, %s39_s13), 0  ;;  %p144_p5 = scmp.eq.s32.totalorder %s898_s11, 0 }
   0xe   : > { %1451 = sst [smem:[#allocation14_spill]] %s1468_s13  ;;  %p1240_p4 = por %p138_p2, %p137_p1 }
   0xf   : > { %s127_s16 = ssub.s32 %s1148_s9, %s1468_s13  ;;  %p256_p6 = scmp.eq.s32.totalorder %s898_s11, 1 }
  0x10   : > { %p128_p7 = scmp.eq.s32.totalorder %s127_s16, 0  ;;  %p1246_p8 = por %p144_p5, %p143_p3 }
  0x11   : > { %p1250_p9 = por %p256_p6, %p137_p1  ;;  %p262_p10 = scmp.eq.s32.totalorder %s899_s12, 1 }
  0x12   : > { %s1255_s19 = scalar_select %p128_p7, %s1140_s29, %s130_s14  }
  0x13   : > { %p1257_p11 = por %p262_p10, %p143_p3  ;;  %p901_p12 = scmp.ge.s32.totalorder %s1152_s10, 2 }
  0x14   : > { %1455 = sst [smem:[#allocation15_spill]] %s1255_s19  ;;  %p952_p13 = scmp.lt.s32.totalorder %s1152_s10, 2 }
  0x15   : > { %s1456_s20 = scalar_select %p1257_p11, 1, 0 }
  0x16   : > { %s324_s21 = sand.u32 1, %s1140_s29   ;;  %s903_s23 = sshll.u32 %s1148_s9, 3 }
  0x17   : > { %1457 = sst [smem:[#allocation16_spill]] %s1456_s20  ;;  %s902_s22 = sshll.u32 %s324_s21, 3 }
  0x18   : > { %s332_s26 = scalar_lea.hbm %s1439_s3, %s903_s23  ;;  %s328_s11 = scalar_lea.vmem [#allocation3], %s902_s22 }
  0x19   : > { %s336_s16 = sshll.u32 %s328_s11, 4  ;;  %s334_s13 = sshll.u32 %s332_s26, 4  ;;  %s337_s16 = int_to_ptr.vmem [resolvable:$true] %s336_s16  ;;  %s335_s13 = int_to_ptr.hbm [resolvable:$true] %s334_s13 }
  0x1a   : > { %p942_p0 = pnand %p952_p13, %p1240_p4  ;;  %p906_p1 = scmp.ge.s32.totalorder %s1152_s10, 1 }
  0x1b   : > { %p360_p2 = scmp.lt.s32.totalorder %s1152_s10, 3  ;;  %s325_s12 = scalar_lea.sflag [#allocation4], %s324_s21 }
  0x1c   : > { %944 = dma.hbm_to_vmem [thread:$0]  (!%p942_p0), %s335_s13, 128, %s337_s16, %s325_s12  }
  0x1d   : > { %p361_p3 = pnand %p906_p1, %p360_p2  ;;  %s351_s9 = scalar_lea.hbm %s1440_s4, %s903_s23 }
  0x1e   : > { %s347_s29 = scalar_lea.vmem [#allocation6], %s902_s22  ;;  %s353_s24 = sshll.u32 %s351_s9, 4  ;;  %s354_s24 = int_to_ptr.hbm [resolvable:$true] %s353_s24 }
  0x1f   : > { %s355_s20 = sshll.u32 %s347_s29, 4  ;;  %s344_s25 = scalar_lea.sflag [#allocation7], %s324_s21  ;;  %s356_s20 = int_to_ptr.vmem [resolvable:$true] %s355_s20 }
  0x20   : > { %947 = dma.hbm_to_vmem [thread:$0]  (!%p942_p0), %s354_s24, 128, %s356_s20, %s344_s25  }
  0x21   : > { %364 = sbr.rel (%p361_p3) target bundleno = 348 (0x15c), region = 52  ;;  %s1276_s15 = sand.u32 (!%p361_p3), 1, %s1136_s28  }
  0x22   : > { %s1279_s13 = sshll.u32 (!%p361_p3), %s1276_s15, 3  ;;  %s367_s26 = scalar_lea.sflag (!%p361_p3), [#allocation4], %s1276_s15 }
  0x23   : > { %s370_s19 = scalar_lea.vmem (!%p361_p3), [#allocation3], %s1279_s13 }
  0x26   : > { %1119 = dma.done.wait (%p1246_p8), %s367_s26, 128  }
  0x27   : > { %1121 = vsyncadd (%p1246_p8), %s367_s26, 4294967168  ;;  %s377_s29 = scalar_lea.sflag [#allocation7], %s1276_s15 }
  0x28   : > { %1123 = dma.done.wait (%p1246_p8), %s377_s29, 128  }
  0x29   : > { %1125 = vsyncadd (%p1246_p8), %s377_s29, 4294967168  ;;  %v584_v0 = vlaneseq  ;;  %p443_p4 = scmp.lt.s32.totalorder %s1144_s30, 1  ;;  %v482_v2 = vld [vmem:[%s1441_s5 + $0x18] sm:$0xff]  ;;  %v481_v3 = vld [vmem:[%s1441_s5 + $0x10] sm:$0xff]  ;;  %vm483_vm0 = vcmask 261120   ;;  %s1458_s12 = scalar_lea.vmem [#allocation6], %s1279_s13 }
  0x2a   : > { %520 = vmatpush.msra.mxu0 %v482_v2  ;;  %927 = vmatpush.msra.mxu2 %v482_v2  ;;  %v480_v4 = vld [vmem:[%s1441_s5 + $0x8] sm:$0xff]  ;;  %v479_v7 = vld [vmem:[%s1441_s5] sm:$0xff]  ;;  %v704_v23 = vld [vmem:[%s1442_s6 + $0x78] sm:$0xff] }
  0x2b   : > { %v585_v1 = vshrl.u32 %v584_v0, 7  ;;  %s1295_s20 = scalar_select %p443_p4, %s1144_s30, 1  ;;  %928 = vmatpush.msra.mxu3 %v482_v2  ;;  %709 = vmatpush.msra.mxu1 %v704_v23  ;;  %v703_v24 = vld [vmem:[%s1442_s6 + $0x70] sm:$0xff]  ;;  %v702_v25 = vld [vmem:[%s1442_s6 + $0x68] sm:$0xff]  ;;  %v701_v26 = vld [vmem:[%s1442_s6 + $0x60] sm:$0xff] }
  0x2c   : > { %521 = vmatpush.msra.mxu0 %v481_v3  ;;  %929 = vmatpush.msra.mxu2 %v481_v3  ;;  %v700_v27 = vld [vmem:[%s1442_s6 + $0x58] sm:$0xff]  ;;  %v699_v28 = vld [vmem:[%s1442_s6 + $0x50] sm:$0xff]  ;;  %v698_v29 = vld [vmem:[%s1442_s6 + $0x48] sm:$0xff] }
  0x2d   : > { %1003 = vset.pattern.permute.xlu1 %v585_v1  ;;  %1002 = vset.pattern.permute.xlu0 %v585_v1  ;;  %s912_s21 = sshll.u32 %s1295_s20, 3  ;;  %s926_s22 = sshll.u32 %s1295_s20, 6  ;;  %v697_v30 = vld [vmem:[%s1442_s6 + $0x40] sm:$0xff]  ;;  %v696_v31 = vld [vmem:[%s1442_s6 + $0x38] sm:$0xff]  ;;  %v695_v32 = vld [vmem:[%s1442_s6 + $0x30] sm:$0xff] }
  0x2e   : > { %1004 = vset.pattern.permute.xlu2 %v585_v1  ;;  %s458_s17 = scalar_lea.vmem %s1437_s1, %s912_s21  ;;  %s1316_s23 = scalar_lea.vmem %s1436_s0, %s926_s22  ;;  %930 = vmatpush.msra.mxu3 %v481_v3  ;;  %v694_v33 = vld [vmem:[%s1442_s6 + $0x28] sm:$0xff]  ;;  %v693_v34 = vld [vmem:[%s1442_s6 + $0x20] sm:$0xff]  ;;  %v692_v35 = vld [vmem:[%s1442_s6 + $0x18] sm:$0xff] }
  0x2f   : > { %v582_v5 = vld [vmem:[%s458_s17] sm:$0xff]  ;;  %522 = vmatpush.msra.mxu0 %v480_v4  ;;  %931 = vmatpush.msra.mxu2 %v480_v4  ;;  %v474_v9 = vld [vmem:[%s1316_s23 + $0x18] sm:$0xff]  ;;  %v477_v10 = vld [vmem:[%s1316_s23 + $0x30] sm:$0xff]  ;;  %s465_s11 = scalar_lea.vmem %s1438_s2, %s912_s21  ;;  %s923_s20 = sshll.u32 %s1144_s30, 3 }
  0x30   : > { %v597_v6 = vperm.slane %v582_v5, 2  ;;  %v471_v8 = vld [vmem:[%s1316_s23] sm:$0xff]  ;;  %932 = vmatpush.msra.mxu3 %v480_v4  ;;  %v583_v11 = vperm.slane %v582_v5, 0  ;;  %v611_v12 = vperm.slane %v582_v5, 4  ;;  %v604_v13 = vperm.slane %v582_v5, 3  ;;  %v472_v14 = vld [vmem:[%s1316_s23 + $0x8] sm:$0xff]  ;;  %710 = vmatpush.msra.mxu1 %v703_v24  ;;  %s744_s17 = scalar_lea.hbm %s1444_s8, %s923_s20 }
  0x31   : > { %523 = vmatpush.msra.mxu0 %v479_v7  ;;  %933 = vmatpush.msra.mxu2 %v479_v7  ;;  %v475_v15 = vld [vmem:[%s1316_s23 + $0x20] sm:$0xff]  ;;  %v478_v16 = vld [vmem:[%s1316_s23 + $0x38] sm:$0xff]  ;;  %v590_v17 = vperm.slane %v582_v5, 1  ;;  %v618_v18 = vperm.slane %v582_v5, 5  ;;  %v632_v19 = vperm.slane %v582_v5, 7  ;;  %v473_v20 = vld [vmem:[%s1316_s23 + $0x10] sm:$0xff] }
  0x32   : > { %934 = vmatpush.msra.mxu3 %v479_v7  ;;  %914 = vmatmul.msk.f32.vlgmr.msra.gmra.mxu0 %vm483_vm0, %v471_v8  ;;  %v476_v21 = vld [vmem:[%s1316_s23 + $0x28] sm:$0xff]  ;;  %v625_v22 = vperm.slane %v582_v5, 6  ;;  %v691_v37 = vld [vmem:[%s1442_s6 + $0x10] sm:$0xff]  ;;  %v689_v41 = vld [vmem:[%s1442_s6] sm:$0xff]  ;;  %s748_s24 = sshll.u32 %s744_s17, 4  ;;  %s734_s30 = scalar_lea.sflag [#allocation5], %s1276_s15  ;;  %s749_s24 = int_to_ptr.hbm [resolvable:$true] %s748_s24 }
  0x33   : > { %917 = vmatmul.msk.f32.vlgmr.msra.gmra.mxu2 %vm483_vm0, %v474_v9  ;;  %920 = vmatmul.msk.f32.vlgmr.msra.gmra.mxu3 %vm483_vm0, %v477_v10  ;;  %v690_v40 = vld [vmem:[%s1442_s6 + $0x8] sm:$0xff]  ;;  %v549_v46 = vld [vmem:[%s465_s11] sm:$0xff]  ;;  %s1080_s25 = sshra.s32 %s749_s24, 4  ;;  %s1086_s11 = scalar_lea.hbm %s1444_s8, 16  ;;  %s1081_s25 = int_to_ptr.hbm [resolvable:$true] %s1080_s25 }
  0x34   : > { %711 = vmatpush.msra.mxu1 %v702_v25  ;;  %v552_v48 = vrot.slane %v549_v46, 2  ;;  %v556_v49 = vrot.slane %v549_v46, 6  ;;  %v554_v51 = vrot.slane %v549_v46, 4  ;;  %v557_v52 = vrot.slane %v549_v46, 7  ;;  %s1082_s26 = scalar_lea.hbm %s1081_s25, 8  ;;  %p1087_p8 = scmp.lt.s32.totalorder %s1081_s25, %s1444_s8 }
  0x35   : > { %602 = vperm.xlu1 %1003, %v597_v6   ;;  %588 = vperm.xlu0 %1002, %v583_v11   ;;  %v553_v53 = vrot.slane %v549_v46, 3  ;;  %v551_v54 = vrot.slane %v549_v46, 1  ;;  %v555_v61 = vrot.slane %v549_v46, 5  ;;  %v558_v62 = vperm.slane %v549_v46, 0  ;;  %p1083_p5 = scmp.ne.s32.totalorder %s1081_s25, %s1082_s26  ;;  %p1088_p10 = scmp.lt.s32.totalorder %s1086_s11, %s1082_s26 }
  0x36   : > { %616 = vperm.xlu2 %1004, %v611_v12   ;;  %712 = vmatpush.msra.mxu1 %v701_v26  ;;  %v560_v55 = vperm.slane %v552_v48, 0  ;;  %v564_v57 = vperm.slane %v556_v49, 0  ;;  %v562_v58 = vperm.slane %v554_v51, 0  ;;  %v565_v59 = vperm.slane %v557_v52, 0 }
  0x37   : > { %v561_v0 = vperm.slane %v553_v53, 0  ;;  %v559_v2 = vperm.slane %v551_v54, 0  ;;  %v563_v8 = vperm.slane %v555_v61, 0  ;;  %p1084_p6 = pnand %p1083_p5, %p1250_p9  ;;  %p1089_p13 = por %p1088_p10, %p1087_p8 }
  0x38   : > { %713 = vmatpush.msra.mxu1 %v700_v27 }
  0x39   : > { %p1085_p7 = pneg %p1084_p6 }
  0x3a   : > { %915 = vmatmul.msk.f32.gmra.mxu0 %vm483_vm0, %v472_v14  ;;  %714 = vmatpush.msra.mxu1 %v699_v28 }
  0x3b   : > { %918 = vmatmul.msk.f32.gmra.mxu2 %vm483_vm0, %v475_v15  ;;  %921 = vmatmul.msk.f32.gmra.mxu3 %vm483_vm0, %v478_v16  ;;  %p1090_p0 = pnand %p1089_p13, %p1085_p7 }
  0x3c   : > { %715 = vmatpush.msra.mxu1 %v698_v29 }
  0x3d   : > { %609 = vperm.xlu1 %1003, %v604_v13   ;;  %595 = vperm.xlu0 %1002, %v590_v17  }
  0x3e   : > { %623 = vperm.xlu2 %1004, %v618_v18   ;;  %716 = vmatpush.msra.mxu1 %v697_v30  ;;  %v686_v30 = vld [vmem:[%s370_s19] sm:$0xff]  ;;  %s441_s19 = scalar_lea.vmem [#allocation8], %s1279_s13 }
  0x3f   : > { %s746_s14 = sshll.u32 %s441_s19, 4  ;;  %s747_s14 = int_to_ptr.vmem [resolvable:$true] %s746_s14 }
  0x40   : > { %717 = vmatpush.msra.mxu1 %v696_v31 }
  0x42   : > { %916 = vmatmul.msk.f32.gmra.mxu0 %vm483_vm0, %v473_v20  ;;  %718 = vmatpush.msra.mxu1 %v695_v32 }
  0x43   : > { %919 = vmatmul.msk.f32.gmra.mxu2 %vm483_vm0, %v476_v21 }
  0x44   : > { %719 = vmatpush.msra.mxu1 %v694_v33 }
  0x45   : > { %637 = vperm.xlu1 %1003, %v632_v19   ;;  %630 = vperm.xlu0 %1002, %v625_v22  }
  0x46   : > { %720 = vmatpush.msra.mxu1 %v693_v34  ;;  %v1005_v34 = vld [vmem:[%s1443_s7] ss:$0 sm:$0xff] }
  0x48   : > { %721 = vmatpush.msra.mxu1 %v692_v35 }
  0x4a   : > { %722 = vmatpush.msra.mxu1 %v691_v37 }
  0x4c   : > { %723 = vmatpush.msra.mxu1 %v690_v40 }
  0x4e   : > { %724 = vmatpush.msra.mxu1 %v689_v41 }
  0x90   : > { %v617_v50 = vpop.permute.xlu2 %616 }
  0x91   : > { %vm643_vm2 = vcmp.gt.f32.partialorder %v617_v50, 0.0 }
  0x98   : > { %v624_v12 = vpop.permute.xlu2 %623 }
  0x99   : > { %vm644_vm8 = vcmp.gt.f32.partialorder %v624_v12, 0.0 }
  0xa7   : > { %v589_v36 = vpop.permute.xlu0 %588  ;;  %v603_v38 = vpop.permute.xlu1 %602 }
  0xa8   : > { %vm641_vm1 = vcmp.gt.f32.partialorder %v603_v38, 0.0  ;;  %vm639_vm4 = vcmp.gt.f32.partialorder %v589_v36, 0.0  ;;  %v729_v36 = vld [vmem:[%s1458_s12] sm:$0xff] }
  0xaf   : > { %v525_v39 = vpop.f32.mrf.mxu0  ;;  %v596_v44 = vpop.permute.xlu0 %595 }
  0xb0   : > { %v610_v47 = vpop.permute.xlu1 %609  ;;  %v574_v9 = vadd.f32 %v558_v62, %v525_v39  ;;  %vm640_vm7 = vcmp.gt.f32.partialorder %v596_v44, 0.0 }
  0xb1   : > { %vm642_vm5 = vcmp.gt.f32.partialorder %v610_v47, 0.0 }
  0xb2   : > { %v663_v19 = vsel %vm639_vm4, %v574_v9, -1000000.0 }
  0xb6   : > { %v534_v42 = vpop.f32.mrf.mxu2  ;;  %v543_v43 = vpop.f32.mrf.mxu3 }
  0xb7   : > { %v528_v45 = vpop.f32.mrf.mxu0  ;;  %v631_v1 = vpop.permute.xlu0 %630  ;;  %v580_v4 = vadd.f32 %v564_v57, %v543_v43  ;;  %v577_v10 = vadd.f32 %v561_v0, %v534_v42 }
  0xb8   : > { %v638_v5 = vpop.permute.xlu1 %637  ;;  %vm645_vm3 = vcmp.gt.f32.partialorder %v631_v1, 0.0  ;;  %v575_v11 = vadd.f32 %v559_v2, %v528_v45 }
  0xb9   : > { %vm646_vm6 = vcmp.gt.f32.partialorder %v638_v5, 0.0  ;;  %v669_v15 = vsel %vm645_vm3, %v580_v4, -1000000.0  ;;  %v666_v21 = vsel %vm642_vm5, %v577_v10, -1000000.0 }
  0xba   : > { %v664_v22 = vsel %vm640_vm7, %v575_v11, -1000000.0 }
  0xbe   : > { %v537_v56 = vpop.f32.mrf.mxu2  ;;  %v546_v63 = vpop.f32.mrf.mxu3 }
  0xbf   : > { %v531_v60 = vpop.f32.mrf.mxu0  ;;  %v578_v6 = vadd.f32 %v562_v58, %v537_v56  ;;  %v581_v7 = vadd.f32 %v565_v59, %v546_v63 }
  0xc0   : > { %v576_v3 = vadd.f32 %v560_v55, %v531_v60 }
  0xc1   : > { %v667_v16 = vsel %vm643_vm2, %v578_v6, -1000000.0  ;;  %v670_v17 = vsel %vm646_vm6, %v581_v7, -1000000.0 }
  0xc2   : > { %v665_v13 = vsel %vm641_vm1, %v576_v3, -1000000.0  ;;  %v672_v24 = vmax.f32 %v663_v19, %v667_v16  ;;  %v675_v25 = vmax.f32 %v666_v21, %v670_v17 }
  0xc3   : > { %v674_v20 = vmax.f32 %v665_v13, %v669_v15 }
  0xc5   : > { %v677_v27 = vmax.f32 %v674_v20, %v675_v25 }
  0xc6   : > { %v540_v14 = vpop.f32.mrf.mxu2 }
  0xc7   : > { %v579_v18 = vadd.f32 %v563_v8, %v540_v14 }
  0xc9   : > { %v668_v23 = vsel %vm644_vm8, %v579_v18, -1000000.0 }
  0xca   : > { %v673_v26 = vmax.f32 %v664_v22, %v668_v23 }
  0xcc   : > { %v676_v28 = vmax.f32 %v672_v24, %v673_v26 }
  0xce   : > { %v678_v29 = vmax.f32 %v676_v28, %v677_v27 }
  0xd0   : > { %v679_v31 = vmax.f32 %v678_v29, -1000000.0 }
  0xd2   : > { %vm685_vm9 = vcmp.gt.f32.partialorder %v679_v31, -500000.0  ;;  %v687_v32 = vadd.f32 %v686_v30, %v679_v31 }
  0xd4   : > { %v688_v33 = vsel %vm685_vm9, %v687_v32, -1000000.0 }
  0xd5   : > { %725 = vmatmul.f32.vlgmr.msra.gmra.mxu1 %v688_v33 }
 0x152   : > { %v726_v35 = vpop.f32.mrf.mxu1 }
 0x153   : > { %v727_v37 = vadd.f32 %v1005_v34, %v726_v35 }
 0x155   : > { %v730_v38 = vadd.f32 %v729_v36, %v727_v37 }
 0x157   : > { %v731_v39 = vmax.f32 %v730_v38, 0.0 }
 0x159   : > { %732 = vst [vmem:[%s441_s19] sm:$0xff] %v731_v39 }
 0x15a   : > { %1093 = shalt.err (!%p1090_p0)
}
 0x15b   : > { %939 = dma.vmem_to_hbm [thread:$0]  (%p1250_p9), %s747_s14, 128, %s749_s24, %s734_s30  }
 0x15c PF: > { %s760_s21 = sand.u32 1, %s1132_s27   ;;  %p949_p1 = pnand %p901_p12, %p1257_p11 }
 0x15d   : > { %s761_s16 = scalar_lea.sflag [#allocation5], %s760_s21 }
 0x15e   : > { %p950_p2 = pneg %p949_p1 }
 0x160   : > { %1127 = dma.done.wait (%p950_p2), %s761_s16, 128  }
 0x161   : > { %1129 = vsyncadd (%p950_p2), %s761_s16, 4294967168  ;;  %s27_s10 = sadd.s32 1, %s1152_s10   ;;  %s1460_s9 = sld [smem:[#allocation12_spill]] }
 0x162   : > { %p24_p3 = scmp.ge.s32.totalorder %s27_s10, 4   ;;  %s1461_s29 = sld [smem:[#allocation15_spill]] }
 0x163   : > { %s1462_s30 = sld [smem:[#allocation13_spill]]  ;;  %s1464_s27 = smov %s1136_s28 }
 0x164   : > { %s1463_s18 = sld [smem:[#allocation14_spill]] }
 0x166   :  { %26 = sbr.rel (!%p24_p3) target bundleno = 8 (0x8), region = 127 }
 0x167   : > { %s1465_s28 = smov %s1460_s9 }
 0x16a   : > { %s1466_s9 = smov %s1463_s18 }
 0x16b   :  { %767 = vsyncpa [#allocation4], 1 }
 0x16c   :  { %769 = vsyncpa [#allocation4 + $0x1], 1 }
 0x16d   :  { %770 = vsyncpa [#allocation7], 1 }
 0x16e   :  { %772 = vsyncpa [#allocation7 + $0x1], 1 }
 0x16f   :  { %773 = vsyncpa [#allocation5], 1 }
 0x170   :  { %775 = vsyncpa [#allocation5 + $0x1], 1 }

</bundles_post_ra>
